<compile_context>
chip_gen: v7x
topology: tpu7x:2x2x1
jax: 0.10.0
libtpu: 0.0.40
codegen_flags: <defaults>
</compile_context>

<pallas_src>
import jax
import jax.numpy as jnp
from jax import lax
from jax.experimental import pallas as pl
from jax.experimental.pallas import tpu as pltpu


EPS = 1e-5  # PyTorch BatchNorm1d default


# ---------------------------------------------------------------------------
# Kernel. Tiles:
#   x_ref  : (tb, D)  input tile, native row-major layout (contiguous slab DMA)
#   w1_ref : (H, D)   fc1 weight with BN1 folded in (bf16 or f32)
#   b1_ref : (H, 1)   fc1 bias   with BN1 folded in (f32)
#   w2_ref : (H, 1)   fc2 weight with BN2 folded in, as a column (f32)
#   b2_ref : (1, 1)   fc2 bias   with BN2 folded in (SMEM scalar, f32)
#   o_ref  : (1, tb)  lane-dense output row (f32)
# ---------------------------------------------------------------------------
def simple_news_net_kernel(x_ref, w1_ref, b1_ref, w2_ref, b2_ref, o_ref):
    # fc1 (+ folded bn1): contract over D with x kept row-major; the result is
    # feature-major (H, tb) so the batch sits on the 128-lane axis.  f32 accumulation.
    h = lax.dot_general(
        w1_ref[...], x_ref[...],
        dimension_numbers=(((1,), (1,)), ((), ())),
        preferred_element_type=jnp.float32,
    )
    h = h + b1_ref[...]                       # (H, tb) + (H, 1) broadcast over lanes
    h = jnp.maximum(h, 0.0)                   # relu (on the f32 accumulator)
    # dropout: identity in eval mode
    # fc2 (+ folded bn2): tiny H->1 contraction as VPU mul + sublane reduce (XLU);
    # b2 is a free SMEM scalar read.
    o_ref[...] = jnp.sum(h * w2_ref[...], axis=0, keepdims=True) + b2_ref[0, 0]


def _fold_bn_into_linears(p):
    """Fold eval-mode BN1 into fc1 and BN2 into fc2 (pure wrapper-side math).

    Row-major forward:  h = x @ w1 + b1 ; bn1 ; relu ; bn2 ; out = . @ w2 + b2
      bn(h) = (h - m) * s + be   with  s = g * rsqrt(v + eps)
    => w1f = w1 * s1,  b1f = (b1 - m1) * s1 + be1
       bn2 sits right before fc2:  (r * s2 + t2) @ w2 + b2 = r @ (w2 * s2^T) + (t2 @ w2 + b2)
    """
    s1 = p["g1"] * lax.rsqrt(p["v1"] + EPS)              # (1, H)
    s2 = p["g2"] * lax.rsqrt(p["v2"] + EPS)              # (1, H)
    w1f = p["w1"] * s1                                   # (D, H)
    b1f = (p["b1"] - p["m1"]) * s1 + p["be1"]            # (1, H)
    t2 = p["be2"] - p["m2"] * s2                         # (1, H)
    w2f = p["w2"] * s2.T                                 # (H, 1)
    b2f = t2 @ p["w2"] + p["b2"]                         # (1, 1)
    return w1f, b1f, w2f, b2f


def _pick_batch_tile(B):
    """Batch tile: one step for small B; for large B a big lane-dense tile (amortize
    the ~0.35 us/step pipeline overhead) capped so the grid keeps >= ~4 'parallel'
    steps and v7x's two TensorCores both get work (no effect on single-TC v5e/v6e)."""
    if B <= 1024:
        return B
    return max(128, min(4096, ((B // 4) // 128) * 128))


def simple_news_net(x, params, *, tb=None, compute_dtype=jnp.bfloat16):
    """x: (B, input_dim) float32.  params: dict of PyTorch-shaped (transposed) weights.

    Returns (B, 1) float32, matching the PyTorch module output (eval mode).
    `compute_dtype` is the dtype of the MXU operands (x, w1); accumulation and the
    epilogue are always f32.  In a jitted pipeline the cast fuses into x's producer
    (or pass bf16 activations directly) so the DMA carries half the bytes.
    """
    B, D = x.shape
    H = params["w1"].shape[1]

    if tb is None:
        tb = _pick_batch_tile(B)
    grid = pl.cdiv(B, tb)
    if grid > 1 and tb % 128 != 0:
        raise ValueError("with more than one grid step, tb must be a multiple of 128")
    B_pad = grid * tb

    # Fold BN into the Linear layers; all layout plumbing happens on the tiny weights.
    w1f, b1f, w2f, b2f = _fold_bn_into_linears(params)

    x_k = x
    if B_pad != B:
        x_k = jnp.pad(x_k, ((0, B_pad - B), (0, 0)))     # pad last tile (sliced off below)
    x_k = x_k.astype(compute_dtype)                       # MXU operand
    w1k = w1f.T.astype(compute_dtype)                     # (H, D) MXU operand
    b1k = b1f.T.astype(jnp.float32)                       # (H, 1) f32 epilogue
    w2k = w2f.astype(jnp.float32)                         # (H, 1) f32 epilogue
    b2k = b2f.astype(jnp.float32)                         # (1, 1) SMEM scalar

    itemsize = jnp.dtype(compute_dtype).itemsize
    cost = pl.CostEstimate(
        flops=2 * B_pad * D * H + 2 * B_pad * H,
        transcendentals=0,
        bytes_accessed=(B_pad * D * itemsize          # x
                        + H * D * itemsize            # w1
                        + (2 * H + 1) * 4             # b1, w2, b2
                        + B_pad * 4),                 # output
    )

    rep = lambda shape: pl.BlockSpec(shape, lambda i: (0, 0))   # resident param block

    grid_spec = pltpu.PrefetchScalarGridSpec(
        num_scalar_prefetch=0,
        grid=(grid,),
        in_specs=[
            pl.BlockSpec((tb, D), lambda i: (i, 0)),            # x tile: contiguous slab
            rep((H, D)),                                        # w1 (BN1 folded)
            rep((H, 1)),                                        # b1 (BN1 folded)
            rep((H, 1)),                                        # w2 column (BN2 folded)
            pl.BlockSpec(memory_space=pltpu.MemorySpace.SMEM),  # b2 scalar
        ],
        out_specs=pl.BlockSpec((1, tb), lambda i: (0, i)),      # lane-dense output row
    )

    out = pl.pallas_call(
        simple_news_net_kernel,
        out_shape=jax.ShapeDtypeStruct((1, B_pad), jnp.float32),
        grid_spec=grid_spec,
        compiler_params=pltpu.CompilerParams(dimension_semantics=("parallel",)),
        cost_estimate=cost,
    )(x_k, w1k, b1k, w2k, b2k)

    return out[:, :B].T                                   # (B, 1), same as PyTorch


def init_params(key, input_dim, hidden=32):
    """Deterministic parameter init matching the module's shapes.

    nn.Linear weights are (out, in) in PyTorch; stored transposed as (in, out).
    """
    ks = jax.random.split(key, 8)
    f32 = jnp.float32
    w1 = jax.random.normal(ks[0], (input_dim, hidden), f32) * 0.1   # fc1.weight^T
    b1 = jax.random.normal(ks[1], (1, hidden), f32) * 0.1           # fc1.bias
    w2 = jax.random.normal(ks[2], (hidden, 1), f32) * 0.1           # fc2.weight^T
    b2 = jax.random.normal(ks[3], (1, 1), f32) * 0.1                # fc2.bias
    # BatchNorm1d(hidden) params + running stats (non-trivial, deterministic)
    g1 = 1.0 + 0.05 * jax.random.normal(ks[4], (1, hidden), f32)
    be1 = 0.05 * jax.random.normal(ks[5], (1, hidden), f32)
    m1 = 0.1 * jnp.sin(jnp.arange(hidden, dtype=f32)).reshape(1, hidden)
    v1 = 1.0 + 0.1 * jnp.cos(jnp.arange(hidden, dtype=f32)).reshape(1, hidden) ** 2
    g2 = 1.0 + 0.05 * jax.random.normal(ks[6], (1, hidden), f32)
    be2 = 0.05 * jax.random.normal(ks[7], (1, hidden), f32)
    m2 = 0.05 * jnp.cos(jnp.arange(hidden, dtype=f32)).reshape(1, hidden)
    v2 = 1.0 + 0.05 * jnp.sin(jnp.arange(hidden, dtype=f32)).reshape(1, hidden) ** 2
    return dict(w1=w1, b1=b1, w2=w2, b2=b2,
                g1=g1, be1=be1, m1=m1, v1=v1,
                g2=g2, be2=be2, m2=m2, v2=v2)


def reference_forward(x, p):
    """Pure-JAX reference reproducing the PyTorch eval-mode forward (un-folded BN)."""
    h = x @ p["w1"] + p["b1"]
    h = (h - p["m1"]) / jnp.sqrt(p["v1"] + EPS) * p["g1"] + p["be1"]
    h = jnp.maximum(h, 0.0)
    h = (h - p["m2"]) / jnp.sqrt(p["v2"] + EPS) * p["g2"] + p["be2"]
    return h @ p["w2"] + p["b2"]


if __name__ == "__main__":
    INPUT_DIM, HIDDEN = 64, 32
    key = jax.random.PRNGKey(0)
    kx, kp, kx2 = jax.random.split(key, 3)
    params = init_params(kp, INPUT_DIM, HIDDEN)

    # 1) Small batch, single grid step, f32 compute path: tight check vs reference.
    B = 16
    x = jax.random.normal(kx, (B, INPUT_DIM), jnp.float32)
    out = jax.block_until_ready(simple_news_net(x, params, compute_dtype=jnp.float32))
    ref = reference_forward(x, params)
    assert out.shape == (B, 1)
    assert jnp.allclose(out, ref, atol=1e-5, rtol=1e-5), "f32 path mismatch vs reference"

    # 2) Multi-step grid with padding (B=160, tb=128 -> 2 steps, pad to 256) using the
    #    default bf16 MXU operands (f32 accumulation): looser tolerance for bf16 inputs.
    B2 = 160
    x2 = jax.random.normal(kx2, (B2, INPUT_DIM), jnp.float32)
    out2 = jax.block_until_ready(simple_news_net(x2, params, tb=128))
    ref2 = reference_forward(x2, params)
    assert out2.shape == (B2, 1)
    assert jnp.allclose(out2, ref2, atol=3e-2, rtol=3e-2), "bf16 path mismatch vs reference"

    print("KERNEL_OK")
</pallas_src>

<mosaic_0001>
module attributes {stable_mosaic.version = 11 : i64} {
  func.func @simple_news_net_kernel(%arg0: i32, %arg1: memref<16x64xf32, #tpu.memory_space<vmem>>, %arg2: memref<32x64xf32, #tpu.memory_space<vmem>>, %arg3: memref<32x1xf32, #tpu.memory_space<vmem>>, %arg4: memref<32x1xf32, #tpu.memory_space<vmem>>, %arg5: memref<1x1xf32, #tpu.memory_space<smem>>, %arg6: memref<1x16xf32, #tpu.memory_space<vmem>>) attributes {dimension_semantics = [#tpu.dimension_semantics<parallel>], iteration_bounds = array<i64: 1>, scalar_prefetch = 0 : i64, scratch_operands = 0 : i64, tpu.core_type = #tpu.core_type<tc>, window_params = [{transform_indices = @transform_0, window_bounds = array<i64: 16, 64>}, {pipeline_mode = #tpu.pipeline_mode<synchronous>, transform_indices = @transform_1, window_bounds = array<i64: 32, 64>}, {pipeline_mode = #tpu.pipeline_mode<synchronous>, transform_indices = @transform_2, window_bounds = array<i64: 32, 1>}, {pipeline_mode = #tpu.pipeline_mode<synchronous>, transform_indices = @transform_3, window_bounds = array<i64: 32, 1>}, {transform_indices = @transform_4, window_bounds = array<i64: 1, 1>}, {transform_indices = @transform_5, window_bounds = array<i64: 1, 16>}]} {
    %c0 = arith.constant 0 : index
    %c0_0 = arith.constant 0 : index
    %0 = vector.load %arg2[%c0, %c0_0] : memref<32x64xf32, #tpu.memory_space<vmem>>, vector<32x64xf32>
    %c0_1 = arith.constant 0 : index
    %c0_2 = arith.constant 0 : index
    %1 = vector.load %arg1[%c0_1, %c0_2] : memref<16x64xf32, #tpu.memory_space<vmem>>, vector<16x64xf32>
    %cst = arith.constant dense<0.000000e+00> : vector<32x16xf32>
    %2 = tpu.matmul %0, %1, %cst {dimension_numbers = #tpu.dot_dimension_numbers<[1], [1], [0], [0], [0, 0, 1, 0], [], []>} : vector<32x64xf32>, vector<16x64xf32>, vector<32x16xf32> -> vector<32x16xf32>
    %c0_3 = arith.constant 0 : index
    %c0_4 = arith.constant 0 : index
    %3 = vector.load %arg3[%c0_3, %c0_4] : memref<32x1xf32, #tpu.memory_space<vmem>>, vector<32x1xf32>
    %4 = vector.broadcast %3 : vector<32x1xf32> to vector<32x16xf32>
    %5 = arith.addf %2, %4 : vector<32x16xf32>
    %cst_5 = arith.constant 0.000000e+00 : f32
    %6 = vector.broadcast %cst_5 : f32 to vector<32x16xf32>
    %7 = arith.maximumf %5, %6 : vector<32x16xf32>
    %c0_6 = arith.constant 0 : index
    %c0_7 = arith.constant 0 : index
    %8 = vector.load %arg4[%c0_6, %c0_7] : memref<32x1xf32, #tpu.memory_space<vmem>>, vector<32x1xf32>
    %9 = vector.broadcast %8 : vector<32x1xf32> to vector<32x16xf32>
    %10 = arith.mulf %7, %9 : vector<32x16xf32>
    %cst_8 = arith.constant dense<0.000000e+00> : vector<16xf32>
    %11 = vector.multi_reduction <add>, %10, %cst_8 [0] : vector<32x16xf32> to vector<16xf32>
    %12 = vector.shape_cast %11 : vector<16xf32> to vector<1x16xf32>
    %c0_9 = arith.constant 0 : index
    %c0_10 = arith.constant 0 : index
    %13 = memref.load %arg5[%c0_9, %c0_10] : memref<1x1xf32, #tpu.memory_space<smem>>
    %14 = vector.broadcast %13 : f32 to vector<1x16xf32>
    %15 = arith.addf %12, %14 : vector<1x16xf32>
    %c0_11 = arith.constant 0 : index
    %c0_12 = arith.constant 0 : index
    %16 = vector.load %arg6[%c0_11, %c0_12] : memref<1x16xf32, #tpu.memory_space<vmem>>, vector<1x16xf32>
    tpu.vector_store %arg6[%c0_11, %c0_12], %15 {strides = array<i32>} : memref<1x16xf32, #tpu.memory_space<vmem>>, vector<1x16xf32>,
    return
  }
  func.func @transform_0(%arg0: i32) -> (i32, i32) {
    %c0_i32 = arith.constant 0 : i32
    %c0_i32_0 = arith.constant 0 : i32
    return %arg0, %c0_i32 : i32, i32
  }
  func.func @transform_1(%arg0: i32) -> (i32, i32) {
    %c0_i32 = arith.constant 0 : i32
    %c0_i32_0 = arith.constant 0 : i32
    %c0_i32_1 = arith.constant 0 : i32
    return %c0_i32, %c0_i32_0 : i32, i32
  }
  func.func @transform_2(%arg0: i32) -> (i32, i32) {
    %c0_i32 = arith.constant 0 : i32
    %c0_i32_0 = arith.constant 0 : i32
    %c0_i32_1 = arith.constant 0 : i32
    return %c0_i32, %c0_i32_0 : i32, i32
  }
  func.func @transform_3(%arg0: i32) -> (i32, i32) {
    %c0_i32 = arith.constant 0 : i32
    %c0_i32_0 = arith.constant 0 : i32
    %c0_i32_1 = arith.constant 0 : i32
    return %c0_i32, %c0_i32_0 : i32, i32
  }
  func.func @transform_4(%arg0: i32) -> (i32, i32) {
    %c0_i32 = arith.constant 0 : i32
    %c0_i32_0 = arith.constant 0 : i32
    %c0_i32_1 = arith.constant 0 : i32
    return %c0_i32, %c0_i32_0 : i32, i32
  }
  func.func @transform_5(%arg0: i32) -> (i32, i32) {
    %c0_i32 = arith.constant 0 : i32
    %c0_i32_0 = arith.constant 0 : i32
    return %c0_i32, %arg0 : i32, i32
  }
}

</mosaic_0001>

<bundles_post_ra>
// kernel: tpu_custom_call.1
= control target key start
LH: loop header
LB: loop body
LE: loop exit
PB: predicated region body
PF: predicated region fallthrough
CT: control target
= control target key end

     0   :  { %vm52_vm0 = vcmask 523264   ;;  %v279_v5 = vmov 0   ;;  %s374_s0 = inlined_call_operand.vmem [shape: f32[16,64], index: 0, kind: input, shape index: {}]   ;;  %s375_s1 = inlined_call_operand.vmem [shape: f32[32,64], index: 1, kind: input, shape index: {}]   ;;  %s376_s2 = inlined_call_operand.vmem [shape: f32[32,1], index: 2, kind: input, shape index: {}]   ;;  %s377_s3 = inlined_call_operand.vmem [shape: f32[32,1], index: 3, kind: input, shape index: {}]   ;;  %s378_s4 = inlined_call_operand.<no memory space> [shape: f32[1,1], index: 4, kind: input, shape index: {}]   ;;  %s379_s5 = inlined_call_operand.hbm [shape: f32[1,16], index: 5, kind: output, shape index: {}]  }
   0x1   :  { %v26_v0 = vld [vmem:[%s374_s0] sm:$0xff]  ;;  %v27_v1 = vld [vmem:[%s374_s0 + $0x8] sm:$0xff]  ;;  %vm244_vm1 = vmpackc.low %vm52_vm0, %vm52_vm0  ;;  %253 = vset.pattern.permute.xlu0 %v279_v5  ;;  %254 = vset.pattern.permute.xlu1 %v279_v5 }
   0x2   :  { %v22_v2 = vld [vmem:[%s375_s1] sm:$0xff]  ;;  %v243_v3 = vpack.c.bf16 %v27_v1, %v26_v0  ;;  %v24_v4 = vld [vmem:[%s375_s1 + $0x10] sm:$0xff] }
   0x3   :  { %237 = vmatprep.mubr.msk.f32.mxu0 %vm52_vm0, %v22_v2  ;;  %240 = vmatprep.mubr.msk.f32.mxu1 %vm52_vm0, %v24_v4  ;;  %v28_v6 = vld [vmem:[%s376_s2] sm:$0xff]  ;;  %v30_v7 = vld [vmem:[%s376_s2 + $0x10] sm:$0xff] }
   0x4   :  { %245 = vmatprep.subr.msk.bf16.mxu0 %vm244_vm1, %v243_v3  ;;  %249 = vmatprep.subr.msk.bf16.mxu1 %vm244_vm1, %v243_v3 }
   0x5   :  { %248 = vmatpush3.bf16.xpose.msk.msra.mxu0 %vm244_vm1, %v243_v3  ;;  %250 = vmatpush3.bf16.xpose.msk.msra.mxu1 %vm244_vm1, %v243_v3 }
   0x6   :  { %34 = vperm.xlu0 %253, %v28_v6   ;;  %44 = vperm.xlu1 %254, %v30_v7  }
   0x7   :  { %11 = vsyncpa [#allocation4], 0  ;;  %v29_v8 = vld [vmem:[%s376_s2 + $0x8] sm:$0xff]  ;;  %v31_v9 = vld [vmem:[%s376_s2 + $0x18] sm:$0xff]  ;;  %vm188_vm2 = vcmask 130048   ;;  %v203_v52 = vstv %s378_s4  ;;  %s280_s19 = smov [#allocation3]  }
   0x8   :  { %v23_v10 = vld [vmem:[%s375_s1 + $0x8] sm:$0xff]  ;;  %v25_v11 = vld [vmem:[%s375_s1 + $0x18] sm:$0xff]  ;;  %v160_v12 = vld [vmem:[%s377_s3] sm:$0xff]  ;;  %s213_s20 = sshll.u32 %s280_s19, 4  ;;  %vm205_vm3 = vcmask 122880   ;;  %s214_s20 = int_to_ptr.vmem [resolvable:$true] %s213_s20 }
   0x9   :  { %v161_v13 = vld [vmem:[%s377_s3 + $0x8] sm:$0xff]  ;;  %v162_v14 = vld [vmem:[%s377_s3 + $0x10] sm:$0xff]  ;;  %v163_v15 = vld [vmem:[%s377_s3 + $0x18] sm:$0xff]  ;;  %s255_s21 = scalar_lea.vmem %s214_s20, 16  ;;  %s259_s22 = scalar_lea.vmem %s214_s20, 32 }
   0xa   :  { %39 = vperm.xlu0 %253, %v29_v8   ;;  %49 = vperm.xlu1 %254, %v31_v9   ;;  %p256_p0 = scmp.ne.s32.totalorder %s214_s20, %s255_s21  ;;  %p260_p1 = scmp.lt.s32.totalorder %s214_s20, %s214_s20 }
   0xb   :  { %p261_p2 = scmp.lt.s32.totalorder %s259_s22, %s255_s21 }
   0xc   :  { %238 = vmatmul.mubr.msk.f32.vlgmr.msra.gmra.mrb[0].mxu0 %vm52_vm0, %v23_v10  ;;  %241 = vmatmul.mubr.msk.f32.vlgmr.msra.gmra.mrb[0].mxu1 %vm52_vm0, %v25_v11 }
   0xd   :  { %p262_p3 = por %p261_p2, %p260_p1 }
   0xe   :  { %166 = vperm.xlu0 %253, %v160_v12   ;;  %171 = vperm.xlu1 %254, %v161_v13  }
   0xf   :  { %p263_p4 = pnand %p262_p3, %p256_p0 }
  0x12   :  { %176 = vperm.xlu0 %253, %v162_v14   ;;  %181 = vperm.xlu1 %254, %v163_v15  }
  0x85   :  { %v35_v16 = vpop.permute.xlu0 %34  ;;  %v45_v17 = vpop.permute.xlu1 %44 }
  0x89   :  { %v40_v18 = vpop.permute.xlu0 %39  ;;  %v50_v19 = vpop.permute.xlu1 %49 }
  0x8d   :  { %v167_v20 = vpop.permute.xlu0 %166  ;;  %v172_v21 = vpop.permute.xlu1 %171 }
  0x91   :  { %v177_v34 = vpop.permute.xlu0 %176  ;;  %v182_v38 = vpop.permute.xlu1 %181 }
  0xdf   :  { %v239_v22 = vpop.f32.mrb[0].mxu0  ;;  %v242_v23 = vpop.f32.mrb[0].mxu1 }
  0xe0   :  { %v143_v24 = vadd.f32 %v239_v22, %v40_v18  ;;  %v153_v25 = vadd.f32 %v242_v23, %v50_v19  ;;  %v137_v26 = vpop.f32.mrb[1].mxu0  ;;  %v147_v27 = vpop.f32.mrb[1].mxu1 }
  0xe1   :  { %v138_v28 = vadd.f32 %v137_v26, %v35_v16  ;;  %v148_v29 = vadd.f32 %v147_v27, %v45_v17 }
  0xe2   :  { %v157_v30 = vmax.f32 %v143_v24, 0.0  ;;  %v159_v31 = vmax.f32 %v153_v25, 0.0 }
  0xe3   :  { %v156_v32 = vmax.f32 %v138_v28, 0.0  ;;  %v158_v33 = vmax.f32 %v148_v29, 0.0 }
  0xe4   :  { %v185_v35 = vmul.f32 %v172_v21, %v157_v30  ;;  %v187_v40 = vmul.f32 %v182_v38, %v159_v31 }
  0xe5   :  { %v184_v36 = vmul.f32 %v167_v20, %v156_v32  ;;  %v186_v37 = vmul.f32 %v177_v34, %v158_v33 }
  0xe6   :  { %v190_v39 = vsel %vm188_vm2, %v185_v35, 0.0  ;;  %v194_v45 = vsel %vm188_vm2, %v187_v40, 0.0 }
  0xe7   :  { %v189_v41 = vsel %vm188_vm2, %v184_v36, 0.0  ;;  %v192_v43 = vsel %vm188_vm2, %v186_v37, 0.0 }
  0xe8   :  { %v191_v42 = vadd.f32 %v190_v39, %v189_v41 }
  0xea   :  { %v193_v44 = vadd.f32 %v192_v43, %v191_v42 }
  0xec   :  { %v195_v46 = vadd.f32 %v194_v45, %v193_v44 }
  0xee   :  { %v196_v47 = vrot.slane %v195_v46, 4 }
  0xf0   :  { %v197_v48 = vadd.f32 %v196_v47, %v195_v46 }
  0xf2   :  { %v198_v49 = vrot.slane %v197_v48, 2 }
  0xf4   :  { %v199_v50 = vadd.f32 %v198_v49, %v197_v48 }
  0xf6   :  { %v200_v51 = vrot.slane %v199_v50, 1 }
  0xf8   :  { %v201_v53 = vadd.f32 %v200_v51, %v199_v50 }
  0xfa   :  { %v204_v54 = vadd.f32 %v203_v52, %v201_v53 }
  0xfc   :  { %206 = vst.msk [vmem:[#allocation3] sm:$0x1] %vm205_vm3, %v204_v54 }
  0xfd   :  { %266 = shalt.err (!%p263_p4)
}
  0xfe   :  { %s267_s25 = scalar_lea.hbm %s379_s5, 16 }
  0xff   :  { %p268_p5 = scmp.ne.s32.totalorder %s379_s5, %s267_s25  ;;  %p271_p6 = scmp.lt.u32.totalorder %s267_s25, %s379_s5 }
 0x101   :  { %p273_p7 = pnand %p271_p6, %p268_p5 }
 0x103   :  { %276 = shalt.err (!%p273_p7)
}
 0x104   :  { %216 = dma.vmem_to_hbm [thread:$0]  %s214_s20, 16, %s379_s5, [#allocation4]  }
 0x105   :  { %277 = dma.done.wait [#allocation4], 16  }
 0x106   :  { %278 = vsyncadd [#allocation4], 4294967280 }
 0x107   :  { %220 = vsyncpa [#allocation4], 1 }

</bundles_post_ra>
